<compile_context>
chip_gen: v7x
topology: tpu7x:2x2x1
jax: 0.10.0
libtpu: 0.0.40
codegen_flags: <defaults>
</compile_context>

<pallas_src>
import math

import jax
import jax.numpy as jnp
from jax.experimental import pallas as pl
from jax.experimental.pallas import tpu as pltpu

MXU_DTYPE = jnp.float32  # flip to jnp.bfloat16 on v6e/v7x


def lstm_kernel(xp_ref, wih_ref, whh_ref, b_ref, out_ref, pre_ref):
    """Fused LSTM forward over one batch tile.

    xp_ref  : (T, BT, F)     pooled input sequence, time-major
    wih_ref : (F, 4*HID)     fused input weights  (gate order i|f|g|o)
    whh_ref : (HID, 4*HID)   fused hidden weights (gate order i|f|g|o)
    b_ref   : (1, 4*HID)     fused bias (b_ih + b_hh)
    out_ref : (BT, T*HID)    hidden states, batch-major & lane-dense
    pre_ref : (T, BT, 4*HID) VMEM scratch: precomputed input projection
    """
    T, BT, F = xp_ref.shape
    HID = whh_ref.shape[0]

    # --- Input projection hoisted out of the recurrence: one big MXU matmul,
    #     bias folded in (broadcast issued once, not per step).
    x_all = xp_ref[...].reshape(T * BT, F).astype(MXU_DTYPE)
    pre = jnp.dot(x_all, wih_ref[...].astype(MXU_DTYPE),
                  preferred_element_type=jnp.float32) + b_ref[...]
    pre_ref[...] = pre.reshape(T, BT, 4 * HID)

    whh = whh_ref[...].astype(MXU_DTYPE)  # loop-invariant, hoisted

    # --- Serial recurrence: h/c stay in vregs, loop fully unrolled (T static & small).
    h = jnp.zeros((BT, HID), jnp.float32)
    c = jnp.zeros((BT, HID), jnp.float32)
    for t in range(T):
        gates = pre_ref[t] + jnp.dot(h.astype(MXU_DTYPE), whh,
                                     preferred_element_type=jnp.float32)
        i_g = jax.nn.sigmoid(gates[:, 0 * HID:1 * HID])
        f_g = jax.nn.sigmoid(gates[:, 1 * HID:2 * HID])
        g_g = jnp.tanh(gates[:, 2 * HID:3 * HID])
        o_g = jax.nn.sigmoid(gates[:, 3 * HID:4 * HID])
        c = f_g * c + i_g * g_g
        h = o_g * jnp.tanh(c)
        # Static, batch-major store; off the h/c critical path.
        out_ref[:, t * HID:(t + 1) * HID] = h


def rnn_forward(x, w_ih, w_hh, b_ih, b_hh, *, batch_tile=8):
    """Equivalent of RNN.forward(x): x (B, 1, H, W) -> (B, (W//2)*HID)."""
    B, C, Hdim, Wdim = x.shape
    assert C == 1
    HID = w_hh.shape[1]
    T, F = Wdim // 2, Hdim // 2

    # squeeze(1) + permute(0,2,1) + MaxPool2d(2) done in XLA (one fused reduce),
    # so the kernel DMAs only the pooled (T, B, F) sequence (4x less than before).
    xs = jnp.transpose(x[:, 0], (0, 2, 1))            # (B, W, H)
    xs = xs[:, :2 * T, :2 * F]                        # floor odd dims like PyTorch
    pooled = jnp.max(xs.reshape(B, T, 2, F, 2), axis=(2, 4))   # (B, T, F)

    # Pad batch to a sublane multiple and go time-major for the kernel.
    Bp = ((B + batch_tile - 1) // batch_tile) * batch_tile
    pooled = jnp.pad(pooled, ((0, Bp - B), (0, 0), (0, 0)))
    pooled_tm = jnp.transpose(pooled, (1, 0, 2)).astype(jnp.float32)   # (T, Bp, F)

    # Fuse PyTorch per-gate params into lane-aligned matrices (gate order i,f,g,o).
    wih_f = jnp.asarray(w_ih, jnp.float32).T              # (F, 4*HID)
    whh_f = jnp.asarray(w_hh, jnp.float32).T              # (HID, 4*HID)
    b_f = (b_ih + b_hh).astype(jnp.float32)[None, :]      # (1, 4*HID)

    out = pl.pallas_call(
        lstm_kernel,
        out_shape=jax.ShapeDtypeStruct((Bp, T * HID), jnp.float32),
        grid_spec=pltpu.PrefetchScalarGridSpec(
            num_scalar_prefetch=0,
            grid=(Bp // batch_tile,),
            in_specs=[
                pl.BlockSpec((T, batch_tile, F), lambda b: (0, b, 0)),
                pl.BlockSpec((F, 4 * HID), lambda b: (0, 0)),
                pl.BlockSpec((HID, 4 * HID), lambda b: (0, 0)),
                pl.BlockSpec((1, 4 * HID), lambda b: (0, 0)),
            ],
            out_specs=pl.BlockSpec((batch_tile, T * HID), lambda b: (b, 0)),
            scratch_shapes=[pltpu.VMEM((T, batch_tile, 4 * HID), jnp.float32)],
        ),
        compiler_params=pltpu.CompilerParams(
            dimension_semantics=("parallel",)),   # batch-independent -> megacore on v7x
    )(pooled_tm, wih_f, whh_f, b_f)

    # Output is already batch-major and flattened; just drop the batch padding.
    return out[:B]


# ----------------------- pure-JAX reference (for checking) -----------------------
def rnn_reference(x, w_ih, w_hh, b_ih, b_hh):
    B, C, Hdim, Wdim = x.shape
    HID = w_hh.shape[1]
    T, F = Wdim // 2, Hdim // 2
    xs = jnp.transpose(x[:, 0], (0, 2, 1))[:, :2 * T, :2 * F]
    pooled = jnp.max(xs.reshape(B, T, 2, F, 2), axis=(2, 4))    # (B, T, F)
    h = jnp.zeros((B, HID), jnp.float32)
    c = jnp.zeros((B, HID), jnp.float32)
    outs = []
    for t in range(T):
        gates = pooled[:, t] @ w_ih.T + b_ih + h @ w_hh.T + b_hh
        i, f, g, o = jnp.split(gates, 4, axis=1)
        i, f, o = jax.nn.sigmoid(i), jax.nn.sigmoid(f), jax.nn.sigmoid(o)
        g = jnp.tanh(g)
        c = f * c + i * g
        h = o * jnp.tanh(c)
        outs.append(h)
    return jnp.stack(outs, axis=1).reshape(B, -1)               # (B, T*HID)


if __name__ == "__main__":
    # Small shapes implied by the module: batch=2, channels=1, H=input_size=16, W=16,
    # hidden=64 (CRNN_a constructs RNN(input_size, 64)).
    B, Hdim, Wdim, HID = 2, 16, 16, 64
    F = Hdim // 2

    key = jax.random.PRNGKey(0)
    kx, k1, k2, k3, k4 = jax.random.split(key, 5)
    x = jax.random.normal(kx, (B, 1, Hdim, Wdim), dtype=jnp.float32)

    # PyTorch LSTM default init: U(-1/sqrt(HID), 1/sqrt(HID)).
    bound = 1.0 / math.sqrt(HID)
    w_ih = jax.random.uniform(k1, (4 * HID, F), jnp.float32, -bound, bound)
    w_hh = jax.random.uniform(k2, (4 * HID, HID), jnp.float32, -bound, bound)
    b_ih = jax.random.uniform(k3, (4 * HID,), jnp.float32, -bound, bound)
    b_hh = jax.random.uniform(k4, (4 * HID,), jnp.float32, -bound, bound)

    out = jax.jit(rnn_forward)(x, w_ih, w_hh, b_ih, b_hh)
    out = jax.block_until_ready(out)

    ref = rnn_reference(x, w_ih, w_hh, b_ih, b_hh)
    assert out.shape == (B, (Wdim // 2) * HID), out.shape
    max_err = float(jnp.max(jnp.abs(out - ref)))
    assert jnp.allclose(out, ref, atol=2e-4, rtol=2e-4), max_err

    print("KERNEL_OK")
</pallas_src>

<mosaic_0001>
module attributes {stable_mosaic.version = 11 : i64} {
  func.func @lstm_kernel(%arg0: i32, %arg1: memref<8x8x8xf32, #tpu.memory_space<vmem>>, %arg2: memref<8x256xf32, #tpu.memory_space<vmem>>, %arg3: memref<64x256xf32, #tpu.memory_space<vmem>>, %arg4: memref<1x256xf32, #tpu.memory_space<vmem>>, %arg5: memref<8x512xf32, #tpu.memory_space<vmem>>, %arg6: memref<8x8x256xf32, #tpu.memory_space<vmem>>) attributes {dimension_semantics = [#tpu.dimension_semantics<parallel>], iteration_bounds = array<i64: 1>, scalar_prefetch = 0 : i64, scratch_operands = 1 : i64, tpu.core_type = #tpu.core_type<tc>, window_params = [{transform_indices = @transform_0, window_bounds = array<i64: 8, 8, 8>}, {pipeline_mode = #tpu.pipeline_mode<synchronous>, transform_indices = @transform_1, window_bounds = array<i64: 8, 256>}, {pipeline_mode = #tpu.pipeline_mode<synchronous>, transform_indices = @transform_2, window_bounds = array<i64: 64, 256>}, {pipeline_mode = #tpu.pipeline_mode<synchronous>, transform_indices = @transform_3, window_bounds = array<i64: 1, 256>}, {transform_indices = @transform_4, window_bounds = array<i64: 8, 512>}]} {
    %c0 = arith.constant 0 : index
    %c0_0 = arith.constant 0 : index
    %c0_1 = arith.constant 0 : index
    %0 = vector.load %arg1[%c0, %c0_0, %c0_1] : memref<8x8x8xf32, #tpu.memory_space<vmem>>, vector<8x8x8xf32>
    %1 = vector.shape_cast %0 : vector<8x8x8xf32> to vector<64x8xf32>
    %c0_2 = arith.constant 0 : index
    %c0_3 = arith.constant 0 : index
    %2 = vector.load %arg2[%c0_2, %c0_3] : memref<8x256xf32, #tpu.memory_space<vmem>>, vector<8x256xf32>
    %cst = arith.constant dense<0.000000e+00> : vector<64x256xf32>
    %3 = tpu.matmul %1, %2, %cst {dimension_numbers = #tpu.dot_dimension_numbers<[1], [0], [0], [1], [0, 0, 1, 1], [], []>} : vector<64x8xf32>, vector<8x256xf32>, vector<64x256xf32> -> vector<64x256xf32>
    %c0_4 = arith.constant 0 : index
    %c0_5 = arith.constant 0 : index
    %4 = vector.load %arg4[%c0_4, %c0_5] : memref<1x256xf32, #tpu.memory_space<vmem>>, vector<1x256xf32>
    %5 = vector.broadcast %4 : vector<1x256xf32> to vector<64x256xf32>
    %6 = arith.addf %3, %5 : vector<64x256xf32>
    %7 = vector.shape_cast %6 : vector<64x256xf32> to vector<8x8x256xf32>
    %c0_6 = arith.constant 0 : index
    %c0_7 = arith.constant 0 : index
    %c0_8 = arith.constant 0 : index
    %8 = vector.load %arg6[%c0_6, %c0_7, %c0_8] : memref<8x8x256xf32, #tpu.memory_space<vmem>>, vector<8x8x256xf32>
    tpu.vector_store %arg6[%c0_6, %c0_7, %c0_8], %7 {strides = array<i32>} : memref<8x8x256xf32, #tpu.memory_space<vmem>>, vector<8x8x256xf32>,
    %c0_9 = arith.constant 0 : index
    %c0_10 = arith.constant 0 : index
    %9 = vector.load %arg3[%c0_9, %c0_10] : memref<64x256xf32, #tpu.memory_space<vmem>>, vector<64x256xf32>
    %cst_11 = arith.constant 0.000000e+00 : f32
    %10 = vector.broadcast %cst_11 : f32 to vector<8x64xf32>
    %cst_12 = arith.constant 0.000000e+00 : f32
    %11 = vector.broadcast %cst_12 : f32 to vector<8x64xf32>
    %c0_13 = arith.constant 0 : index
    %c0_14 = arith.constant 0 : index
    %c0_15 = arith.constant 0 : index
    %12 = vector.load %arg6[%c0_13, %c0_14, %c0_15] : memref<8x8x256xf32, #tpu.memory_space<vmem>>, vector<1x8x256xf32>
    %13 = vector.shape_cast %12 : vector<1x8x256xf32> to vector<8x256xf32>
    %cst_16 = arith.constant dense<0.000000e+00> : vector<8x256xf32>
    %14 = tpu.matmul %10, %9, %cst_16 {dimension_numbers = #tpu.dot_dimension_numbers<[1], [0], [0], [1], [0, 0, 1, 1], [], []>} : vector<8x64xf32>, vector<64x256xf32>, vector<8x256xf32> -> vector<8x256xf32>
    %15 = arith.addf %13, %14 : vector<8x256xf32>
    %16 = vector.extract_strided_slice %15 {offsets = [0, 0], sizes = [8, 64], strides = [1, 1]} : vector<8x256xf32> to vector<8x64xf32>
    %17 = arith.negf %16 : vector<8x64xf32>
    %18 = math.exp %17 : vector<8x64xf32>
    %cst_17 = arith.constant 1.000000e+00 : f32
    %19 = vector.broadcast %cst_17 : f32 to vector<8x64xf32>
    %20 = arith.addf %19, %18 : vector<8x64xf32>
    %21 = arith.divf %19, %20 : vector<8x64xf32>
    %22 = vector.extract_strided_slice %15 {offsets = [0, 64], sizes = [8, 64], strides = [1, 1]} : vector<8x256xf32> to vector<8x64xf32>
    %23 = arith.negf %22 : vector<8x64xf32>
    %24 = math.exp %23 : vector<8x64xf32>
    %cst_18 = arith.constant 1.000000e+00 : f32
    %25 = vector.broadcast %cst_18 : f32 to vector<8x64xf32>
    %26 = arith.addf %25, %24 : vector<8x64xf32>
    %27 = arith.divf %25, %26 : vector<8x64xf32>
    %28 = vector.extract_strided_slice %15 {offsets = [0, 128], sizes = [8, 64], strides = [1, 1]} : vector<8x256xf32> to vector<8x64xf32>
    %29 = math.tanh %28 : vector<8x64xf32>
    %30 = vector.extract_strided_slice %15 {offsets = [0, 192], sizes = [8, 64], strides = [1, 1]} : vector<8x256xf32> to vector<8x64xf32>
    %31 = arith.negf %30 : vector<8x64xf32>
    %32 = math.exp %31 : vector<8x64xf32>
    %cst_19 = arith.constant 1.000000e+00 : f32
    %33 = vector.broadcast %cst_19 : f32 to vector<8x64xf32>
    %34 = arith.addf %33, %32 : vector<8x64xf32>
    %35 = arith.divf %33, %34 : vector<8x64xf32>
    %36 = arith.mulf %27, %11 : vector<8x64xf32>
    %37 = arith.mulf %21, %29 : vector<8x64xf32>
    %38 = arith.addf %36, %37 : vector<8x64xf32>
    %39 = math.tanh %38 : vector<8x64xf32>
    %40 = arith.mulf %35, %39 : vector<8x64xf32>
    %c0_20 = arith.constant 0 : index
    %c0_21 = arith.constant 0 : index
    %41 = vector.load %arg5[%c0_20, %c0_21] : memref<8x512xf32, #tpu.memory_space<vmem>>, vector<8x64xf32>
    tpu.vector_store %arg5[%c0_20, %c0_21], %40 {strides = array<i32>} : memref<8x512xf32, #tpu.memory_space<vmem>>, vector<8x64xf32>,
    %c1 = arith.constant 1 : index
    %c0_22 = arith.constant 0 : index
    %c0_23 = arith.constant 0 : index
    %42 = vector.load %arg6[%c1, %c0_22, %c0_23] : memref<8x8x256xf32, #tpu.memory_space<vmem>>, vector<1x8x256xf32>
    %43 = vector.shape_cast %42 : vector<1x8x256xf32> to vector<8x256xf32>
    %cst_24 = arith.constant dense<0.000000e+00> : vector<8x256xf32>
    %44 = tpu.matmul %40, %9, %cst_24 {dimension_numbers = #tpu.dot_dimension_numbers<[1], [0], [0], [1], [0, 0, 1, 1], [], []>} : vector<8x64xf32>, vector<64x256xf32>, vector<8x256xf32> -> vector<8x256xf32>
    %45 = arith.addf %43, %44 : vector<8x256xf32>
    %46 = vector.extract_strided_slice %45 {offsets = [0, 0], sizes = [8, 64], strides = [1, 1]} : vector<8x256xf32> to vector<8x64xf32>
    %47 = arith.negf %46 : vector<8x64xf32>
    %48 = math.exp %47 : vector<8x64xf32>
    %cst_25 = arith.constant 1.000000e+00 : f32
    %49 = vector.broadcast %cst_25 : f32 to vector<8x64xf32>
    %50 = arith.addf %49, %48 : vector<8x64xf32>
    %51 = arith.divf %49, %50 : vector<8x64xf32>
    %52 = vector.extract_strided_slice %45 {offsets = [0, 64], sizes = [8, 64], strides = [1, 1]} : vector<8x256xf32> to vector<8x64xf32>
    %53 = arith.negf %52 : vector<8x64xf32>
    %54 = math.exp %53 : vector<8x64xf32>
    %cst_26 = arith.constant 1.000000e+00 : f32
    %55 = vector.broadcast %cst_26 : f32 to vector<8x64xf32>
    %56 = arith.addf %55, %54 : vector<8x64xf32>
    %57 = arith.divf %55, %56 : vector<8x64xf32>
    %58 = vector.extract_strided_slice %45 {offsets = [0, 128], sizes = [8, 64], strides = [1, 1]} : vector<8x256xf32> to vector<8x64xf32>
    %59 = math.tanh %58 : vector<8x64xf32>
    %60 = vector.extract_strided_slice %45 {offsets = [0, 192], sizes = [8, 64], strides = [1, 1]} : vector<8x256xf32> to vector<8x64xf32>
    %61 = arith.negf %60 : vector<8x64xf32>
    %62 = math.exp %61 : vector<8x64xf32>
    %cst_27 = arith.constant 1.000000e+00 : f32
    %63 = vector.broadcast %cst_27 : f32 to vector<8x64xf32>
    %64 = arith.addf %63, %62 : vector<8x64xf32>
    %65 = arith.divf %63, %64 : vector<8x64xf32>
    %66 = arith.mulf %57, %38 : vector<8x64xf32>
    %67 = arith.mulf %51, %59 : vector<8x64xf32>
    %68 = arith.addf %66, %67 : vector<8x64xf32>
    %69 = math.tanh %68 : vector<8x64xf32>
    %70 = arith.mulf %65, %69 : vector<8x64xf32>
    %c0_28 = arith.constant 0 : index
    %c64 = arith.constant 64 : index
    %71 = vector.load %arg5[%c0_28, %c64] : memref<8x512xf32, #tpu.memory_space<vmem>>, vector<8x64xf32>
    tpu.vector_store %arg5[%c0_28, %c64], %70 {strides = array<i32>} : memref<8x512xf32, #tpu.memory_space<vmem>>, vector<8x64xf32>,
    %c2 = arith.constant 2 : index
    %c0_29 = arith.constant 0 : index
    %c0_30 = arith.constant 0 : index
    %72 = vector.load %arg6[%c2, %c0_29, %c0_30] : memref<8x8x256xf32, #tpu.memory_space<vmem>>, vector<1x8x256xf32>
    %73 = vector.shape_cast %72 : vector<1x8x256xf32> to vector<8x256xf32>
    %cst_31 = arith.constant dense<0.000000e+00> : vector<8x256xf32>
    %74 = tpu.matmul %70, %9, %cst_31 {dimension_numbers = #tpu.dot_dimension_numbers<[1], [0], [0], [1], [0, 0, 1, 1], [], []>} : vector<8x64xf32>, vector<64x256xf32>, vector<8x256xf32> -> vector<8x256xf32>
    %75 = arith.addf %73, %74 : vector<8x256xf32>
    %76 = vector.extract_strided_slice %75 {offsets = [0, 0], sizes = [8, 64], strides = [1, 1]} : vector<8x256xf32> to vector<8x64xf32>
    %77 = arith.negf %76 : vector<8x64xf32>
    %78 = math.exp %77 : vector<8x64xf32>
    %cst_32 = arith.constant 1.000000e+00 : f32
    %79 = vector.broadcast %cst_32 : f32 to vector<8x64xf32>
    %80 = arith.addf %79, %78 : vector<8x64xf32>
    %81 = arith.divf %79, %80 : vector<8x64xf32>
    %82 = vector.extract_strided_slice %75 {offsets = [0, 64], sizes = [8, 64], strides = [1, 1]} : vector<8x256xf32> to vector<8x64xf32>
    %83 = arith.negf %82 : vector<8x64xf32>
    %84 = math.exp %83 : vector<8x64xf32>
    %cst_33 = arith.constant 1.000000e+00 : f32
    %85 = vector.broadcast %cst_33 : f32 to vector<8x64xf32>
    %86 = arith.addf %85, %84 : vector<8x64xf32>
    %87 = arith.divf %85, %86 : vector<8x64xf32>
    %88 = vector.extract_strided_slice %75 {offsets = [0, 128], sizes = [8, 64], strides = [1, 1]} : vector<8x256xf32> to vector<8x64xf32>
    %89 = math.tanh %88 : vector<8x64xf32>
    %90 = vector.extract_strided_slice %75 {offsets = [0, 192], sizes = [8, 64], strides = [1, 1]} : vector<8x256xf32> to vector<8x64xf32>
    %91 = arith.negf %90 : vector<8x64xf32>
    %92 = math.exp %91 : vector<8x64xf32>
    %cst_34 = arith.constant 1.000000e+00 : f32
    %93 = vector.broadcast %cst_34 : f32 to vector<8x64xf32>
    %94 = arith.addf %93, %92 : vector<8x64xf32>
    %95 = arith.divf %93, %94 : vector<8x64xf32>
    %96 = arith.mulf %87, %68 : vector<8x64xf32>
    %97 = arith.mulf %81, %89 : vector<8x64xf32>
    %98 = arith.addf %96, %97 : vector<8x64xf32>
    %99 = math.tanh %98 : vector<8x64xf32>
    %100 = arith.mulf %95, %99 : vector<8x64xf32>
    %c0_35 = arith.constant 0 : index
    %c128 = arith.constant 128 : index
    %101 = vector.load %arg5[%c0_35, %c128] : memref<8x512xf32, #tpu.memory_space<vmem>>, vector<8x64xf32>
    tpu.vector_store %arg5[%c0_35, %c128], %100 {strides = array<i32>} : memref<8x512xf32, #tpu.memory_space<vmem>>, vector<8x64xf32>,
    %c3 = arith.constant 3 : index
    %c0_36 = arith.constant 0 : index
    %c0_37 = arith.constant 0 : index
    %102 = vector.load %arg6[%c3, %c0_36, %c0_37] : memref<8x8x256xf32, #tpu.memory_space<vmem>>, vector<1x8x256xf32>
    %103 = vector.shape_cast %102 : vector<1x8x256xf32> to vector<8x256xf32>
    %cst_38 = arith.constant dense<0.000000e+00> : vector<8x256xf32>
    %104 = tpu.matmul %100, %9, %cst_38 {dimension_numbers = #tpu.dot_dimension_numbers<[1], [0], [0], [1], [0, 0, 1, 1], [], []>} : vector<8x64xf32>, vector<64x256xf32>, vector<8x256xf32> -> vector<8x256xf32>
    %105 = arith.addf %103, %104 : vector<8x256xf32>
    %106 = vector.extract_strided_slice %105 {offsets = [0, 0], sizes = [8, 64], strides = [1, 1]} : vector<8x256xf32> to vector<8x64xf32>
    %107 = arith.negf %106 : vector<8x64xf32>
    %108 = math.exp %107 : vector<8x64xf32>
    %cst_39 = arith.constant 1.000000e+00 : f32
    %109 = vector.broadcast %cst_39 : f32 to vector<8x64xf32>
    %110 = arith.addf %109, %108 : vector<8x64xf32>
    %111 = arith.divf %109, %110 : vector<8x64xf32>
    %112 = vector.extract_strided_slice %105 {offsets = [0, 64], sizes = [8, 64], strides = [1, 1]} : vector<8x256xf32> to vector<8x64xf32>
    %113 = arith.negf %112 : vector<8x64xf32>
    %114 = math.exp %113 : vector<8x64xf32>
    %cst_40 = arith.constant 1.000000e+00 : f32
    %115 = vector.broadcast %cst_40 : f32 to vector<8x64xf32>
    %116 = arith.addf %115, %114 : vector<8x64xf32>
    %117 = arith.divf %115, %116 : vector<8x64xf32>
    %118 = vector.extract_strided_slice %105 {offsets = [0, 128], sizes = [8, 64], strides = [1, 1]} : vector<8x256xf32> to vector<8x64xf32>
    %119 = math.tanh %118 : vector<8x64xf32>
    %120 = vector.extract_strided_slice %105 {offsets = [0, 192], sizes = [8, 64], strides = [1, 1]} : vector<8x256xf32> to vector<8x64xf32>
    %121 = arith.negf %120 : vector<8x64xf32>
    %122 = math.exp %121 : vector<8x64xf32>
    %cst_41 = arith.constant 1.000000e+00 : f32
    %123 = vector.broadcast %cst_41 : f32 to vector<8x64xf32>
    %124 = arith.addf %123, %122 : vector<8x64xf32>
    %125 = arith.divf %123, %124 : vector<8x64xf32>
    %126 = arith.mulf %117, %98 : vector<8x64xf32>
    %127 = arith.mulf %111, %119 : vector<8x64xf32>
    %128 = arith.addf %126, %127 : vector<8x64xf32>
    %129 = math.tanh %128 : vector<8x64xf32>
    %130 = arith.mulf %125, %129 : vector<8x64xf32>
    %c0_42 = arith.constant 0 : index
    %c192 = arith.constant 192 : index
    %131 = vector.load %arg5[%c0_42, %c192] : memref<8x512xf32, #tpu.memory_space<vmem>>, vector<8x64xf32>
    tpu.vector_store %arg5[%c0_42, %c192], %130 {strides = array<i32>} : memref<8x512xf32, #tpu.memory_space<vmem>>, vector<8x64xf32>,
    %c4 = arith.constant 4 : index
    %c0_43 = arith.constant 0 : index
    %c0_44 = arith.constant 0 : index
    %132 = vector.load %arg6[%c4, %c0_43, %c0_44] : memref<8x8x256xf32, #tpu.memory_space<vmem>>, vector<1x8x256xf32>
    %133 = vector.shape_cast %132 : vector<1x8x256xf32> to vector<8x256xf32>
    %cst_45 = arith.constant dense<0.000000e+00> : vector<8x256xf32>
    %134 = tpu.matmul %130, %9, %cst_45 {dimension_numbers = #tpu.dot_dimension_numbers<[1], [0], [0], [1], [0, 0, 1, 1], [], []>} : vector<8x64xf32>, vector<64x256xf32>, vector<8x256xf32> -> vector<8x256xf32>
    %135 = arith.addf %133, %134 : vector<8x256xf32>
    %136 = vector.extract_strided_slice %135 {offsets = [0, 0], sizes = [8, 64], strides = [1, 1]} : vector<8x256xf32> to vector<8x64xf32>
    %137 = arith.negf %136 : vector<8x64xf32>
    %138 = math.exp %137 : vector<8x64xf32>
    %cst_46 = arith.constant 1.000000e+00 : f32
    %139 = vector.broadcast %cst_46 : f32 to vector<8x64xf32>
    %140 = arith.addf %139, %138 : vector<8x64xf32>
    %141 = arith.divf %139, %140 : vector<8x64xf32>
    %142 = vector.extract_strided_slice %135 {offsets = [0, 64], sizes = [8, 64], strides = [1, 1]} : vector<8x256xf32> to vector<8x64xf32>
    %143 = arith.negf %142 : vector<8x64xf32>
    %144 = math.exp %143 : vector<8x64xf32>
    %cst_47 = arith.constant 1.000000e+00 : f32
    %145 = vector.broadcast %cst_47 : f32 to vector<8x64xf32>
    %146 = arith.addf %145, %144 : vector<8x64xf32>
    %147 = arith.divf %145, %146 : vector<8x64xf32>
    %148 = vector.extract_strided_slice %135 {offsets = [0, 128], sizes = [8, 64], strides = [1, 1]} : vector<8x256xf32> to vector<8x64xf32>
    %149 = math.tanh %148 : vector<8x64xf32>
    %150 = vector.extract_strided_slice %135 {offsets = [0, 192], sizes = [8, 64], strides = [1, 1]} : vector<8x256xf32> to vector<8x64xf32>
    %151 = arith.negf %150 : vector<8x64xf32>
    %152 = math.exp %151 : vector<8x64xf32>
    %cst_48 = arith.constant 1.000000e+00 : f32
    %153 = vector.broadcast %cst_48 : f32 to vector<8x64xf32>
    %154 = arith.addf %153, %152 : vector<8x64xf32>
    %155 = arith.divf %153, %154 : vector<8x64xf32>
    %156 = arith.mulf %147, %128 : vector<8x64xf32>
    %157 = arith.mulf %141, %149 : vector<8x64xf32>
    %158 = arith.addf %156, %157 : vector<8x64xf32>
    %159 = math.tanh %158 : vector<8x64xf32>
    %160 = arith.mulf %155, %159 : vector<8x64xf32>
    %c0_49 = arith.constant 0 : index
    %c256 = arith.constant 256 : index
    %161 = vector.load %arg5[%c0_49, %c256] : memref<8x512xf32, #tpu.memory_space<vmem>>, vector<8x64xf32>
    tpu.vector_store %arg5[%c0_49, %c256], %160 {strides = array<i32>} : memref<8x512xf32, #tpu.memory_space<vmem>>, vector<8x64xf32>,
    %c5 = arith.constant 5 : index
    %c0_50 = arith.constant 0 : index
    %c0_51 = arith.constant 0 : index
    %162 = vector.load %arg6[%c5, %c0_50, %c0_51] : memref<8x8x256xf32, #tpu.memory_space<vmem>>, vector<1x8x256xf32>
    %163 = vector.shape_cast %162 : vector<1x8x256xf32> to vector<8x256xf32>
    %cst_52 = arith.constant dense<0.000000e+00> : vector<8x256xf32>
    %164 = tpu.matmul %160, %9, %cst_52 {dimension_numbers = #tpu.dot_dimension_numbers<[1], [0], [0], [1], [0, 0, 1, 1], [], []>} : vector<8x64xf32>, vector<64x256xf32>, vector<8x256xf32> -> vector<8x256xf32>
    %165 = arith.addf %163, %164 : vector<8x256xf32>
    %166 = vector.extract_strided_slice %165 {offsets = [0, 0], sizes = [8, 64], strides = [1, 1]} : vector<8x256xf32> to vector<8x64xf32>
    %167 = arith.negf %166 : vector<8x64xf32>
    %168 = math.exp %167 : vector<8x64xf32>
    %cst_53 = arith.constant 1.000000e+00 : f32
    %169 = vector.broadcast %cst_53 : f32 to vector<8x64xf32>
    %170 = arith.addf %169, %168 : vector<8x64xf32>
    %171 = arith.divf %169, %170 : vector<8x64xf32>
    %172 = vector.extract_strided_slice %165 {offsets = [0, 64], sizes = [8, 64], strides = [1, 1]} : vector<8x256xf32> to vector<8x64xf32>
    %173 = arith.negf %172 : vector<8x64xf32>
    %174 = math.exp %173 : vector<8x64xf32>
    %cst_54 = arith.constant 1.000000e+00 : f32
    %175 = vector.broadcast %cst_54 : f32 to vector<8x64xf32>
    %176 = arith.addf %175, %174 : vector<8x64xf32>
    %177 = arith.divf %175, %176 : vector<8x64xf32>
    %178 = vector.extract_strided_slice %165 {offsets = [0, 128], sizes = [8, 64], strides = [1, 1]} : vector<8x256xf32> to vector<8x64xf32>
    %179 = math.tanh %178 : vector<8x64xf32>
    %180 = vector.extract_strided_slice %165 {offsets = [0, 192], sizes = [8, 64], strides = [1, 1]} : vector<8x256xf32> to vector<8x64xf32>
    %181 = arith.negf %180 : vector<8x64xf32>
    %182 = math.exp %181 : vector<8x64xf32>
    %cst_55 = arith.constant 1.000000e+00 : f32
    %183 = vector.broadcast %cst_55 : f32 to vector<8x64xf32>
    %184 = arith.addf %183, %182 : vector<8x64xf32>
    %185 = arith.divf %183, %184 : vector<8x64xf32>
    %186 = arith.mulf %177, %158 : vector<8x64xf32>
    %187 = arith.mulf %171, %179 : vector<8x64xf32>
    %188 = arith.addf %186, %187 : vector<8x64xf32>
    %189 = math.tanh %188 : vector<8x64xf32>
    %190 = arith.mulf %185, %189 : vector<8x64xf32>
    %c0_56 = arith.constant 0 : index
    %c320 = arith.constant 320 : index
    %191 = vector.load %arg5[%c0_56, %c320] : memref<8x512xf32, #tpu.memory_space<vmem>>, vector<8x64xf32>
    tpu.vector_store %arg5[%c0_56, %c320], %190 {strides = array<i32>} : memref<8x512xf32, #tpu.memory_space<vmem>>, vector<8x64xf32>,
    %c6 = arith.constant 6 : index
    %c0_57 = arith.constant 0 : index
    %c0_58 = arith.constant 0 : index
    %192 = vector.load %arg6[%c6, %c0_57, %c0_58] : memref<8x8x256xf32, #tpu.memory_space<vmem>>, vector<1x8x256xf32>
    %193 = vector.shape_cast %192 : vector<1x8x256xf32> to vector<8x256xf32>
    %cst_59 = arith.constant dense<0.000000e+00> : vector<8x256xf32>
    %194 = tpu.matmul %190, %9, %cst_59 {dimension_numbers = #tpu.dot_dimension_numbers<[1], [0], [0], [1], [0, 0, 1, 1], [], []>} : vector<8x64xf32>, vector<64x256xf32>, vector<8x256xf32> -> vector<8x256xf32>
    %195 = arith.addf %193, %194 : vector<8x256xf32>
    %196 = vector.extract_strided_slice %195 {offsets = [0, 0], sizes = [8, 64], strides = [1, 1]} : vector<8x256xf32> to vector<8x64xf32>
    %197 = arith.negf %196 : vector<8x64xf32>
    %198 = math.exp %197 : vector<8x64xf32>
    %cst_60 = arith.constant 1.000000e+00 : f32
    %199 = vector.broadcast %cst_60 : f32 to vector<8x64xf32>
    %200 = arith.addf %199, %198 : vector<8x64xf32>
    %201 = arith.divf %199, %200 : vector<8x64xf32>
    %202 = vector.extract_strided_slice %195 {offsets = [0, 64], sizes = [8, 64], strides = [1, 1]} : vector<8x256xf32> to vector<8x64xf32>
    %203 = arith.negf %202 : vector<8x64xf32>
    %204 = math.exp %203 : vector<8x64xf32>
    %cst_61 = arith.constant 1.000000e+00 : f32
    %205 = vector.broadcast %cst_61 : f32 to vector<8x64xf32>
    %206 = arith.addf %205, %204 : vector<8x64xf32>
    %207 = arith.divf %205, %206 : vector<8x64xf32>
    %208 = vector.extract_strided_slice %195 {offsets = [0, 128], sizes = [8, 64], strides = [1, 1]} : vector<8x256xf32> to vector<8x64xf32>
    %209 = math.tanh %208 : vector<8x64xf32>
    %210 = vector.extract_strided_slice %195 {offsets = [0, 192], sizes = [8, 64], strides = [1, 1]} : vector<8x256xf32> to vector<8x64xf32>
    %211 = arith.negf %210 : vector<8x64xf32>
    %212 = math.exp %211 : vector<8x64xf32>
    %cst_62 = arith.constant 1.000000e+00 : f32
    %213 = vector.broadcast %cst_62 : f32 to vector<8x64xf32>
    %214 = arith.addf %213, %212 : vector<8x64xf32>
    %215 = arith.divf %213, %214 : vector<8x64xf32>
    %216 = arith.mulf %207, %188 : vector<8x64xf32>
    %217 = arith.mulf %201, %209 : vector<8x64xf32>
    %218 = arith.addf %216, %217 : vector<8x64xf32>
    %219 = math.tanh %218 : vector<8x64xf32>
    %220 = arith.mulf %215, %219 : vector<8x64xf32>
    %c0_63 = arith.constant 0 : index
    %c384 = arith.constant 384 : index
    %221 = vector.load %arg5[%c0_63, %c384] : memref<8x512xf32, #tpu.memory_space<vmem>>, vector<8x64xf32>
    tpu.vector_store %arg5[%c0_63, %c384], %220 {strides = array<i32>} : memref<8x512xf32, #tpu.memory_space<vmem>>, vector<8x64xf32>,
    %c7 = arith.constant 7 : index
    %c0_64 = arith.constant 0 : index
    %c0_65 = arith.constant 0 : index
    %222 = vector.load %arg6[%c7, %c0_64, %c0_65] : memref<8x8x256xf32, #tpu.memory_space<vmem>>, vector<1x8x256xf32>
    %223 = vector.shape_cast %222 : vector<1x8x256xf32> to vector<8x256xf32>
    %cst_66 = arith.constant dense<0.000000e+00> : vector<8x256xf32>
    %224 = tpu.matmul %220, %9, %cst_66 {dimension_numbers = #tpu.dot_dimension_numbers<[1], [0], [0], [1], [0, 0, 1, 1], [], []>} : vector<8x64xf32>, vector<64x256xf32>, vector<8x256xf32> -> vector<8x256xf32>
    %225 = arith.addf %223, %224 : vector<8x256xf32>
    %226 = vector.extract_strided_slice %225 {offsets = [0, 0], sizes = [8, 64], strides = [1, 1]} : vector<8x256xf32> to vector<8x64xf32>
    %227 = arith.negf %226 : vector<8x64xf32>
    %228 = math.exp %227 : vector<8x64xf32>
    %cst_67 = arith.constant 1.000000e+00 : f32
    %229 = vector.broadcast %cst_67 : f32 to vector<8x64xf32>
    %230 = arith.addf %229, %228 : vector<8x64xf32>
    %231 = arith.divf %229, %230 : vector<8x64xf32>
    %232 = vector.extract_strided_slice %225 {offsets = [0, 64], sizes = [8, 64], strides = [1, 1]} : vector<8x256xf32> to vector<8x64xf32>
    %233 = arith.negf %232 : vector<8x64xf32>
    %234 = math.exp %233 : vector<8x64xf32>
    %cst_68 = arith.constant 1.000000e+00 : f32
    %235 = vector.broadcast %cst_68 : f32 to vector<8x64xf32>
    %236 = arith.addf %235, %234 : vector<8x64xf32>
    %237 = arith.divf %235, %236 : vector<8x64xf32>
    %238 = vector.extract_strided_slice %225 {offsets = [0, 128], sizes = [8, 64], strides = [1, 1]} : vector<8x256xf32> to vector<8x64xf32>
    %239 = math.tanh %238 : vector<8x64xf32>
    %240 = vector.extract_strided_slice %225 {offsets = [0, 192], sizes = [8, 64], strides = [1, 1]} : vector<8x256xf32> to vector<8x64xf32>
    %241 = arith.negf %240 : vector<8x64xf32>
    %242 = math.exp %241 : vector<8x64xf32>
    %cst_69 = arith.constant 1.000000e+00 : f32
    %243 = vector.broadcast %cst_69 : f32 to vector<8x64xf32>
    %244 = arith.addf %243, %242 : vector<8x64xf32>
    %245 = arith.divf %243, %244 : vector<8x64xf32>
    %246 = arith.mulf %237, %218 : vector<8x64xf32>
    %247 = arith.mulf %231, %239 : vector<8x64xf32>
    %248 = arith.addf %246, %247 : vector<8x64xf32>
    %249 = math.tanh %248 : vector<8x64xf32>
    %250 = arith.mulf %245, %249 : vector<8x64xf32>
    %c0_70 = arith.constant 0 : index
    %c448 = arith.constant 448 : index
    %251 = vector.load %arg5[%c0_70, %c448] : memref<8x512xf32, #tpu.memory_space<vmem>>, vector<8x64xf32>
    tpu.vector_store %arg5[%c0_70, %c448], %250 {strides = array<i32>} : memref<8x512xf32, #tpu.memory_space<vmem>>, vector<8x64xf32>,
    return
  }
  func.func @transform_0(%arg0: i32) -> (i32, i32, i32) {
    %c0_i32 = arith.constant 0 : i32
    %c0_i32_0 = arith.constant 0 : i32
    %c0_i32_1 = arith.constant 0 : i32
    return %c0_i32, %arg0, %c0_i32_0 : i32, i32, i32
  }
  func.func @transform_1(%arg0: i32) -> (i32, i32) {
    %c0_i32 = arith.constant 0 : i32
    %c0_i32_0 = arith.constant 0 : i32
    %c0_i32_1 = arith.constant 0 : i32
    return %c0_i32, %c0_i32_0 : i32, i32
  }
  func.func @transform_2(%arg0: i32) -> (i32, i32) {
    %c0_i32 = arith.constant 0 : i32
    %c0_i32_0 = arith.constant 0 : i32
    %c0_i32_1 = arith.constant 0 : i32
    return %c0_i32, %c0_i32_0 : i32, i32
  }
  func.func @transform_3(%arg0: i32) -> (i32, i32) {
    %c0_i32 = arith.constant 0 : i32
    %c0_i32_0 = arith.constant 0 : i32
    %c0_i32_1 = arith.constant 0 : i32
    return %c0_i32, %c0_i32_0 : i32, i32
  }
  func.func @transform_4(%arg0: i32) -> (i32, i32) {
    %c0_i32 = arith.constant 0 : i32
    %c0_i32_0 = arith.constant 0 : i32
    return %arg0, %c0_i32 : i32, i32
  }
}

</mosaic_0001>

<bundles_post_ra>
// kernel: rnn_forward.1
= control target key start
LH: loop header
LB: loop body
LE: loop exit
PB: predicated region body
PF: predicated region fallthrough
CT: control target
= control target key end

     0   :  { %v1337_v2 = vmov 0.0   ;;  %vm39_vm0 = vcmask 64512   ;;  %v29_v39 = vlaneseq  ;;  %vm211_vm1 = vcmask 523264   ;;  %s1654_s1 = inlined_call_operand.vmem [shape: f32[8,256], index: 1, kind: input, shape index: {}]   ;;  %s1655_s0 = inlined_call_operand.vmem [shape: f32[8,8,8], index: 0, kind: input, shape index: {}]   ;;  %s1656_s2 = inlined_call_operand.vmem [shape: f32[64,256], index: 2, kind: input, shape index: {}]   ;;  %s1657_s3 = inlined_call_operand.vmem [shape: f32[1,256], index: 3, kind: input, shape index: {}]   ;;  %s1658_s4 = inlined_call_operand.vmem [shape: f32[8,512], index: 4, kind: output, shape index: {}]  }
   0x1   :  { %v26_v0 = vld [vmem:[%s1654_s1 + $0x8] sm:$0xff]  ;;  %v25_v1 = vld [vmem:[%s1654_s1] sm:$0xff]  ;;  %128 = vmatprep.mubr.f32.mxu1 %v1337_v2  ;;  %594 = vmatprep.mubr.f32.mxu0 %v1337_v2  ;;  %v196_v5 = vld [vmem:[%s1656_s2 + $0x18] sm:$0xff]  ;;  %vm415_vm2 = vcmask 1048064  }
   0x2   :  { %v17_v3 = vld [vmem:[%s1655_s0] sm:$0xff]  ;;  %64 = vmatprep.subr.mxu1 %v26_v0  ;;  %v194_v4 = vld [vmem:[%s1656_s2 + $0x8] sm:$0xff]  ;;  %v195_v8 = vld [vmem:[%s1656_s2 + $0x10] sm:$0xff]  ;;  %v30_v42 = vshrl.u32 %v29_v39, 7 }
   0x3   :  { %v193_v6 = vld [vmem:[%s1656_s2] sm:$0xff]  ;;  %65 = vmatpush1.msra.mxu1 %v25_v1  ;;  %v1384_v7 = vpack.c.bf16 %v196_v5, %v194_v4  ;;  %v198_v10 = vld [vmem:[%s1656_s2 + $0x28] sm:$0xff]  ;;  %v200_v11 = vld [vmem:[%s1656_s2 + $0x38] sm:$0xff] }
   0x4   :  { %1048 = vmatmul.mubr.msk.f32.vlgmr.msra.gmra.mrb[0].mxu1 %vm39_vm0, %v17_v3  ;;  %v1390_v9 = vpack.c.bf16 %v195_v8, %v193_v6  ;;  %v197_v12 = vld [vmem:[%s1656_s2 + $0x20] sm:$0xff]  ;;  %v18_v13 = vld [vmem:[%s1655_s0 + $0x8] sm:$0xff]  ;;  %v1406_v14 = vpack.c.bf16 %v200_v11, %v198_v10  ;;  %v199_v15 = vld [vmem:[%s1656_s2 + $0x30] sm:$0xff]  ;;  %v31_v45 = vsub.s32 0, %v30_v42  ;;  %v35_v54 = vsub.s32 1, %v30_v42 }
   0x5   :  { %1080 = vmatprep.subr.bf16.mxu1 %v1384_v7  ;;  %134 = vmatprep.mubr.f32.mxu1 %v1337_v2  ;;  %v1412_v16 = vpack.c.bf16 %v199_v15, %v197_v12  ;;  %v202_v17 = vld [vmem:[%s1656_s2 + $0x48] sm:$0xff]  ;;  %v204_v18 = vld [vmem:[%s1656_s2 + $0x58] sm:$0xff]  ;;  %v201_v20 = vld [vmem:[%s1656_s2 + $0x40] sm:$0xff] }
   0x6   :  { %1082 = vmatpush1.bf16.msra.mxu1 %v1390_v9  ;;  %1128 = vmatprep.subr.bf16.mxu0 %v1384_v7  ;;  %v1422_v19 = vpack.c.bf16 %v204_v18, %v202_v17  ;;  %v203_v21 = vld [vmem:[%s1656_s2 + $0x50] sm:$0xff]  ;;  %v206_v22 = vld [vmem:[%s1656_s2 + $0x68] sm:$0xff]  ;;  %v208_v23 = vld [vmem:[%s1656_s2 + $0x78] sm:$0xff] }
   0x7   :  { %1084 = vmatprep.subr.bf16.mxu1 %v1406_v14  ;;  %1130 = vmatpush1.bf16.msra.mxu0 %v1390_v9  ;;  %v19_v24 = vld [vmem:[%s1655_s0 + $0x10] sm:$0xff]  ;;  %v1444_v25 = vpack.c.bf16 %v203_v21, %v201_v20  ;;  %v1447_v26 = vpack.c.bf16 %v208_v23, %v206_v22  ;;  %v205_v27 = vld [vmem:[%s1656_s2 + $0x60] sm:$0xff]  ;;  %v20_v29 = vld [vmem:[%s1655_s0 + $0x18] sm:$0xff] }
   0x8   :  { %1049 = vmatmul.mubr.msk.f32.gmra.mrb[2].mxu1 %vm39_vm0, %v18_v13  ;;  %1132 = vmatprep.subr.bf16.mxu0 %v1406_v14  ;;  %v207_v28 = vld [vmem:[%s1656_s2 + $0x70] sm:$0xff]  ;;  %v21_v31 = vld [vmem:[%s1655_s0 + $0x20] sm:$0xff]  ;;  %v22_v32 = vld [vmem:[%s1655_s0 + $0x28] sm:$0xff] }
   0x9   :  { %140 = vmatprep.mubr.f32.mxu1 %v1337_v2  ;;  %v1463_v30 = vpack.c.bf16 %v207_v28, %v205_v27  ;;  %v23_v33 = vld [vmem:[%s1655_s0 + $0x30] sm:$0xff]  ;;  %v24_v34 = vld [vmem:[%s1655_s0 + $0x38] sm:$0xff]  ;;  %v27_v46 = vld [vmem:[%s1657_s3] sm:$0x3]  ;;  %s1338_s3 = smov 64  }
   0xa   :  { %1086 = vmatpush1.bf16.msra.mxu1 %v1412_v16  ;;  %v1527_v49 = vrot.slane %v27_v46, %v31_v45  ;;  %v1530_v55 = vrot.slane %v27_v46, %v35_v54 }
   0xb   :  { %1088 = vmatprep.subr.bf16.mxu1 %v1422_v19  ;;  %1134 = vmatpush1.bf16.msra.mxu0 %v1412_v16 }
   0xc   :  { %1050 = vmatmul.mubr.msk.f32.gmra.mrb[4].mxu1 %vm39_vm0, %v19_v24  ;;  %1136 = vmatprep.subr.bf16.mxu0 %v1422_v19 }
   0xd   :  { %146 = vmatprep.mubr.f32.mxu1 %v1337_v2 }
   0xe   :  { %1090 = vmatpush1.bf16.msra.mxu1 %v1444_v25 }
   0xf   :  { %1092 = vmatprep.subr.bf16.mxu1 %v1447_v26  ;;  %1138 = vmatpush1.bf16.msra.mxu0 %v1444_v25 }
  0x10   :  { %1051 = vmatmul.mubr.msk.f32.gmra.mrb[6].mxu1 %vm39_vm0, %v20_v29  ;;  %1140 = vmatprep.subr.bf16.mxu0 %v1447_v26 }
  0x11   :  { %152 = vmatprep.mubr.f32.mxu1 %v1337_v2 }
  0x12   :  { %1094 = vmatpush1.bf16.msra.mxu1 %v1463_v30 }
  0x13   :  { %1096 = vmatprep.subr.bf16.mxu1 %v1384_v7  ;;  %1142 = vmatpush1.bf16.msra.mxu0 %v1463_v30 }
  0x14   :  { %1052 = vmatmul.mubr.msk.f32.gmra.mrb[8].mxu1 %vm39_vm0, %v21_v31  ;;  %1144 = vmatprep.subr.bf16.mxu0 %v1384_v7 }
  0x15   :  { %158 = vmatprep.mubr.f32.mxu1 %v1337_v2 }
  0x18   :  { %1053 = vmatmul.mubr.msk.f32.gmra.mrb[10].mxu1 %vm39_vm0, %v22_v32 }
  0x19   :  { %164 = vmatprep.mubr.f32.mxu1 %v1337_v2 }
  0x1c   :  { %1054 = vmatmul.mubr.msk.f32.gmra.mrb[12].mxu1 %vm39_vm0, %v23_v33 }
  0x1d   :  { %170 = vmatprep.mubr.f32.mxu1 %v1337_v2 }
  0x20   :  { %1055 = vmatmul.mubr.msk.f32.gmra.mrb[14].mxu1 %vm39_vm0, %v24_v34 }
  0x21   :  { %279 = vmatprep.mubr.f32.mxu1 %v1337_v2 }
  0x24   :  { %280 = vmatmul.mubr.f32.vlgmr.msra.gmra.mrb[0].mxu1 %v1337_v2 }
  0x25   :  { %1098 = vmatpush1.bf16.msra.mxu1 %v1390_v9  ;;  %384 = vmatprep.mubr.f32.mxu1 %v1337_v2 }
  0x26   :  { %1100 = vmatprep.subr.bf16.mxu1 %v1406_v14 }
  0x29   :  { %1102 = vmatpush1.bf16.msra.mxu1 %v1412_v16 }
  0x2a   :  { %1104 = vmatprep.subr.bf16.mxu1 %v1422_v19 }
  0x2d   :  { %1106 = vmatpush1.bf16.msra.mxu1 %v1444_v25 }
  0x2e   :  { %1108 = vmatprep.subr.bf16.mxu1 %v1447_v26 }
  0x31   :  { %1110 = vmatpush1.bf16.msra.mxu1 %v1463_v30 }
  0x32   :  { %1112 = vmatprep.subr.bf16.mxu1 %v1384_v7 }
  0xe3   :  { %v1504_v35 = vpop.f32.mrb[6].mxu1 }
  0xe4   :  { %v1506_v36 = vpop.f32.mrb[7].mxu1 }
  0xe7   :  { %v1508_v37 = vpop.f32.mrb[8].mxu1 }
  0xe8   :  { %v1510_v38 = vpop.f32.mrb[9].mxu1 }
  0xeb   :  { %v1512_v40 = vpop.f32.mrb[10].mxu1 }
  0xec   :  { %v1514_v41 = vpop.f32.mrb[11].mxu1 }
  0xef   :  { %v1516_v43 = vpop.f32.mrb[12].mxu1 }
  0xf0   :  { %v1518_v44 = vpop.f32.mrb[13].mxu1 }
  0xf3   :  { %v1523_v47 = vpop.f32.mrb[14].mxu1 }
  0xf4   :  { %v1525_v48 = vpop.f32.mrb[15].mxu1 }
  0xf7   :  { %v281_v50 = vpop.f32.mrb[0].mxu1 }
  0xf8   :  { %v1207_v51 = vadd.f32 %v281_v50, %v1527_v49  ;;  %v283_v52 = vpop.f32.mrb[1].mxu1 }
  0xf9   :  { %v1208_v56 = vadd.f32 %v283_v52, %v1530_v55 }
  0xfa   :  { %v1056_v53 = vmul.f32 -1.442695, %v1207_v51 }
  0xfb   :  { %v1057_v62 = vmul.f32 -1.442695, %v1208_v56 }
  0xfc   :  { %1241 = vpow2.f32 %v1056_v53 }
  0xfd   :  { %1243 = vtanh.f32 %v1208_v56 }
 0x106   :  { %v1242_v57 = vpop.eup %1241 }
 0x107   :  { %v291_v58 = vadd.f32 1.0, %v1242_v57  ;;  %v1244_v59 = vpop.eup %1243 }
 0x109   :  { %1245 = vrcp.f32 %v291_v58 }
 0x10a   :  { %1247 = vpow2.f32 %v1057_v62 }
 0x113   :  { %v1246_v60 = vpop.eup %1245 }
 0x114   :  { %v302_v61 = vmul.f32 %v1246_v60, %v1244_v59  ;;  %v1248_v63 = vpop.eup %1247  ;;  %v301_v1 = vmul.f32 0.0, %v1246_v60 }
 0x115   :  { %v298_v0 = vadd.f32 1.0, %v1248_v63 }
 0x116   :  { %304 = vrot.lane.b32.xlu0 %v302_v61, %s1338_s3 }
 0x117   :  { %1249 = vrcp.f32 %v298_v0 }
 0x121   :  { %v1250_v5 = vpop.eup %1249 }
 0x188   :  { %v305_v3 = vpop.permute.xlu0 %304 }
 0x189   :  { %v307_v4 = vadd.f32 %v305_v3, %v301_v1 }
 0x18b   :  { %1251 = vtanh.f32 %v307_v4 }
 0x195   :  { %v1252_v6 = vpop.eup %1251 }
 0x196   :  { %v309_v8 = vmul.f32 %v1252_v6, %v1250_v5  ;;  %v149_v6 = vadd.f32 %v1504_v35, %v1527_v49 }
 0x198   :  { %311 = vrot.lane.b32.xlu0 %v309_v8, %s1338_s3  ;;  %v151_v8 = vadd.f32 %v1506_v36, %v1530_v55 }
 0x20a   :  { %v312_v10 = vpop.permute.xlu0 %311 }
 0x20b   :  { %314 = vst.msk [vmem:[%s1658_s4] sm:$0xff] %vm211_vm1, %v312_v10  ;;  %1058 = vmatmul.mubr.msk.f32.vlgmr.msra.gmra.mrb[2].mxu1 %vm211_vm1, %v312_v10 }
 0x20c   :  { %1114 = vmatpush1.bf16.msra.mxu1 %v1390_v9  ;;  %489 = vmatprep.mubr.f32.mxu1 %v1337_v2 }
 0x20d   :  { %1116 = vmatprep.subr.bf16.mxu1 %v1406_v14 }
 0x210   :  { %1118 = vmatpush1.bf16.msra.mxu1 %v1412_v16 }
 0x211   :  { %1120 = vmatprep.subr.bf16.mxu1 %v1422_v19 }
 0x214   :  { %1122 = vmatpush1.bf16.msra.mxu1 %v1444_v25 }
 0x215   :  { %1124 = vmatprep.subr.bf16.mxu1 %v1447_v26 }
 0x218   :  { %1126 = vmatpush1.bf16.msra.mxu1 %v1463_v30 }
 0x2de   :  { %v386_v11 = vpop.f32.mrb[2].mxu1 }
 0x2df   :  { %v1209_v12 = vadd.f32 %v386_v11, %v1527_v49  ;;  %v388_v13 = vpop.f32.mrb[3].mxu1 }
 0x2e0   :  { %v1210_v17 = vadd.f32 %v388_v13, %v1530_v55 }
 0x2e1   :  { %v1059_v15 = vmul.f32 -1.442695, %v1209_v12 }
 0x2e2   :  { %v1060_v24 = vmul.f32 -1.442695, %v1210_v17 }
 0x2e3   :  { %1253 = vpow2.f32 %v1059_v15 }
 0x2e4   :  { %1255 = vtanh.f32 %v1210_v17 }
 0x2ed   :  { %v1254_v18 = vpop.eup %1253 }
 0x2ee   :  { %v396_v20 = vadd.f32 1.0, %v1254_v18  ;;  %v1256_v21 = vpop.eup %1255 }
 0x2f0   :  { %1257 = vrcp.f32 %v396_v20 }
 0x2f1   :  { %1259 = vpow2.f32 %v1060_v24 }
 0x2fa   :  { %v1258_v22 = vpop.eup %1257 }
 0x2fb   :  { %v407_v23 = vmul.f32 %v1258_v22, %v1256_v21  ;;  %v1260_v27 = vpop.eup %1259  ;;  %v406_v29 = vmul.f32 %v1258_v22, %v307_v4 }
 0x2fc   :  { %v403_v28 = vadd.f32 1.0, %v1260_v27 }
 0x2fd   :  { %409 = vrot.lane.b32.xlu1 %v407_v23, %s1338_s3 }
 0x2fe   :  { %1261 = vrcp.f32 %v403_v28 }
 0x308   :  { %v1262_v33 = vpop.eup %1261 }
 0x36f   :  { %v410_v31 = vpop.permute.xlu1 %409 }
 0x370   :  { %v412_v32 = vadd.f32 %v410_v31, %v406_v29 }
 0x372   :  { %1263 = vtanh.f32 %v412_v32 }
 0x37c   :  { %v1264_v34 = vpop.eup %1263 }
 0x37d   :  { %v414_v39 = vmul.f32 %v1264_v34, %v1262_v33  ;;  %v155_v34 = vadd.f32 %v1508_v37, %v1527_v49 }
 0x37f   :  { %421 = vrot.lane.b32.xlu1 %v414_v39, %s1338_s3  ;;  %416 = vst.msk [vmem:[%s1658_s4] sm:$0xff] %vm415_vm2, %v414_v39  ;;  %v157_v39 = vadd.f32 %v1510_v38, %v1530_v55 }
 0x3f1   :  { %v422_v42 = vpop.permute.xlu1 %421 }
 0x3f2   :  { %1061 = vmatmul.mubr.msk.f32.vlgmr.msra.gmra.mrb[4].mxu1 %vm211_vm1, %v422_v42 }
 0x4c5   :  { %v491_v45 = vpop.f32.mrb[4].mxu1 }
 0x4c6   :  { %v1211_v46 = vadd.f32 %v491_v45, %v1527_v49  ;;  %v493_v50 = vpop.f32.mrb[5].mxu1 }
 0x4c7   :  { %v1212_v52 = vadd.f32 %v493_v50, %v1530_v55 }
 0x4c8   :  { %v1062_v51 = vmul.f32 -1.442695, %v1211_v46 }
 0x4c9   :  { %v1063_v59 = vmul.f32 -1.442695, %v1212_v52 }
 0x4ca   :  { %1265 = vpow2.f32 %v1062_v51 }
 0x4cb   :  { %1267 = vtanh.f32 %v1212_v52 }
 0x4d4   :  { %v1266_v53 = vpop.eup %1265 }
 0x4d5   :  { %v501_v54 = vadd.f32 1.0, %v1266_v53  ;;  %v1268_v56 = vpop.eup %1267 }
 0x4d7   :  { %1269 = vrcp.f32 %v501_v54 }
 0x4d8   :  { %1271 = vpow2.f32 %v1063_v59 }
 0x4e1   :  { %v1270_v57 = vpop.eup %1269 }
 0x4e2   :  { %v512_v58 = vmul.f32 %v1270_v57, %v1268_v56  ;;  %v1272_v60 = vpop.eup %1271  ;;  %v511_v62 = vmul.f32 %v1270_v57, %v412_v32 }
 0x4e3   :  { %v508_v61 = vadd.f32 1.0, %v1272_v60 }
 0x4e4   :  { %514 = vrot.lane.b32.xlu0 %v512_v58, %s1338_s3 }
 0x4e5   :  { %1273 = vrcp.f32 %v508_v61 }
 0x4ef   :  { %v1274_v1 = vpop.eup %1273 }
 0x556   :  { %v515_v63 = vpop.permute.xlu0 %514 }
 0x557   :  { %v517_v0 = vadd.f32 %v515_v63, %v511_v62 }
 0x559   :  { %1275 = vtanh.f32 %v517_v0 }
 0x563   :  { %v1276_v3 = vpop.eup %1275 }
 0x564   :  { %v519_v4 = vmul.f32 %v1276_v3, %v1274_v1  ;;  %v161_v3 = vadd.f32 %v1512_v40, %v1527_v49 }
 0x566   :  { %521 = vrot.lane.b32.xlu1 %v519_v4, %s1338_s3  ;;  %v163_v4 = vadd.f32 %v1514_v41, %v1530_v55 }
 0x5d8   :  { %v522_v5 = vpop.permute.xlu1 %521 }
 0x5d9   :  { %524 = vst.msk [vmem:[%s1658_s4 + $0x8] sm:$0xff] %vm211_vm1, %v522_v5  ;;  %1064 = vmatmul.mubr.msk.f32.vlgmr.msra.gmra.mrb[0].mxu0 %vm211_vm1, %v522_v5 }
 0x5da   :  { %1146 = vmatpush1.bf16.msra.mxu0 %v1390_v9  ;;  %698 = vmatprep.mubr.f32.mxu0 %v1337_v2 }
 0x5db   :  { %1148 = vmatprep.subr.bf16.mxu0 %v1406_v14 }
 0x5de   :  { %1150 = vmatpush1.bf16.msra.mxu0 %v1412_v16 }
 0x5df   :  { %1152 = vmatprep.subr.bf16.mxu0 %v1422_v19 }
 0x5e2   :  { %1154 = vmatpush1.bf16.msra.mxu0 %v1444_v25 }
 0x5e3   :  { %1156 = vmatprep.subr.bf16.mxu0 %v1447_v26 }
 0x5e6   :  { %1158 = vmatpush1.bf16.msra.mxu0 %v1463_v30 }
 0x5e7   :  { %1160 = vmatprep.subr.bf16.mxu0 %v1384_v7 }
 0x6ac   :  { %v596_v10 = vpop.f32.mrb[0].mxu0 }
 0x6ad   :  { %v601_v11 = vadd.f32 %v596_v10, %v149_v6  ;;  %v598_v12 = vpop.f32.mrb[1].mxu0 }
 0x6ae   :  { %v602_v13 = vadd.f32 %v598_v12, %v151_v8 }
 0x6af   :  { %v1065_v15 = vmul.f32 -1.442695, %v601_v11 }
 0x6b0   :  { %v1066_v23 = vmul.f32 -1.442695, %v602_v13 }
 0x6b1   :  { %1277 = vpow2.f32 %v1065_v15 }
 0x6b2   :  { %1279 = vtanh.f32 %v602_v13 }
 0x6bb   :  { %v1278_v17 = vpop.eup %1277 }
 0x6bc   :  { %v606_v18 = vadd.f32 1.0, %v1278_v17  ;;  %v1280_v20 = vpop.eup %1279 }
 0x6be   :  { %1281 = vrcp.f32 %v606_v18 }
 0x6bf   :  { %1283 = vpow2.f32 %v1066_v23 }
 0x6c8   :  { %v1282_v21 = vpop.eup %1281 }
 0x6c9   :  { %v617_v22 = vmul.f32 %v1282_v21, %v1280_v20  ;;  %v1284_v35 = vpop.eup %1283  ;;  %v616_v36 = vmul.f32 %v1282_v21, %v517_v0 }
 0x6ca   :  { %v613_v24 = vadd.f32 1.0, %v1284_v35 }
 0x6cb   :  { %619 = vrot.lane.b32.xlu0 %v617_v22, %s1338_s3 }
 0x6cc   :  { %1285 = vrcp.f32 %v613_v24 }
 0x6d6   :  { %v1286_v29 = vpop.eup %1285 }
 0x73d   :  { %v620_v27 = vpop.permute.xlu0 %619 }
 0x73e   :  { %v622_v28 = vadd.f32 %v620_v27, %v616_v36  ;;  %v167_v27 = vadd.f32 %v1516_v43, %v1527_v49 }
 0x740   :  { %1287 = vtanh.f32 %v622_v28 }
 0x74a   :  { %v1288_v31 = vpop.eup %1287 }
 0x74b   :  { %v624_v32 = vmul.f32 %v1288_v31, %v1286_v29 }
 0x74d   :  { %630 = vrot.lane.b32.xlu1 %v624_v32, %s1338_s3  ;;  %625 = vst.msk [vmem:[%s1658_s4 + $0x8] sm:$0xff] %vm415_vm2, %v624_v32 }
 0x7bf   :  { %v631_v33 = vpop.permute.xlu1 %630 }
 0x7c0   :  { %1067 = vmatmul.mubr.msk.f32.vlgmr.msra.gmra.mrb[2].mxu0 %vm211_vm1, %v631_v33 }
 0x7c1   :  { %1162 = vmatpush1.bf16.msra.mxu0 %v1390_v9  ;;  %803 = vmatprep.mubr.f32.mxu0 %v1337_v2 }
 0x7c2   :  { %1164 = vmatprep.subr.bf16.mxu0 %v1406_v14 }
 0x7c5   :  { %1166 = vmatpush1.bf16.msra.mxu0 %v1412_v16 }
 0x7c6   :  { %1168 = vmatprep.subr.bf16.mxu0 %v1422_v19 }
 0x7c9   :  { %1170 = vmatpush1.bf16.msra.mxu0 %v1444_v25 }
 0x7ca   :  { %1172 = vmatprep.subr.bf16.mxu0 %v1447_v26 }
 0x7cd   :  { %1174 = vmatpush1.bf16.msra.mxu0 %v1463_v30 }
 0x7ce   :  { %1176 = vmatprep.subr.bf16.mxu0 %v1384_v7 }
 0x893   :  { %v700_v42 = vpop.f32.mrb[2].mxu0 }
 0x894   :  { %v705_v45 = vadd.f32 %v700_v42, %v155_v34  ;;  %v702_v46 = vpop.f32.mrb[3].mxu0 }
 0x895   :  { %v706_v50 = vadd.f32 %v702_v46, %v157_v39 }
 0x896   :  { %v1068_v51 = vmul.f32 -1.442695, %v705_v45 }
 0x897   :  { %v1069_v58 = vmul.f32 -1.442695, %v706_v50 }
 0x898   :  { %1289 = vpow2.f32 %v1068_v51  ;;  %v173_v51 = vadd.f32 %v1523_v47, %v1527_v49 }
 0x899   :  { %1291 = vtanh.f32 %v706_v50 }
 0x8a2   :  { %v1290_v52 = vpop.eup %1289 }
 0x8a3   :  { %v710_v53 = vadd.f32 1.0, %v1290_v52  ;;  %v1292_v54 = vpop.eup %1291  ;;  %v175_v52 = vadd.f32 %v1525_v48, %v1530_v55 }
 0x8a5   :  { %1293 = vrcp.f32 %v710_v53 }
 0x8a6   :  { %1295 = vpow2.f32 %v1069_v58 }
 0x8af   :  { %v1294_v56 = vpop.eup %1293 }
 0x8b0   :  { %v721_v57 = vmul.f32 %v1294_v56, %v1292_v54  ;;  %v1296_v37 = vpop.eup %1295  ;;  %v720_v38 = vmul.f32 %v1294_v56, %v622_v28 }
 0x8b1   :  { %v717_v59 = vadd.f32 1.0, %v1296_v37 }
 0x8b2   :  { %723 = vrot.lane.b32.xlu0 %v721_v57, %s1338_s3 }
 0x8b3   :  { %1297 = vrcp.f32 %v717_v59 }
 0x8bd   :  { %v1298_v62 = vpop.eup %1297 }
 0x924   :  { %v724_v60 = vpop.permute.xlu0 %723 }
 0x925   :  { %v726_v61 = vadd.f32 %v724_v60, %v720_v38 }
 0x927   :  { %1299 = vtanh.f32 %v726_v61 }
 0x931   :  { %v1300_v63 = vpop.eup %1299 }
 0x932   :  { %v728_v0 = vmul.f32 %v1300_v63, %v1298_v62 }
 0x934   :  { %730 = vrot.lane.b32.xlu1 %v728_v0, %s1338_s3 }
 0x9a6   :  { %v731_v1 = vpop.permute.xlu1 %730 }
 0x9a7   :  { %733 = vst.msk [vmem:[%s1658_s4 + $0x10] sm:$0xff] %vm211_vm1, %v731_v1  ;;  %1070 = vmatmul.mubr.msk.f32.vlgmr.msra.gmra.mrb[4].mxu0 %vm211_vm1, %v731_v1 }
 0x9a8   :  { %1178 = vmatpush1.bf16.msra.mxu0 %v1390_v9  ;;  %907 = vmatprep.mubr.f32.mxu0 %v1337_v2 }
 0x9a9   :  { %1180 = vmatprep.subr.bf16.mxu0 %v1406_v14 }
 0x9ac   :  { %1182 = vmatpush1.bf16.msra.mxu0 %v1412_v16 }
 0x9ad   :  { %1184 = vmatprep.subr.bf16.mxu0 %v1422_v19 }
 0x9b0   :  { %1186 = vmatpush1.bf16.msra.mxu0 %v1444_v25 }
 0x9b1   :  { %1188 = vmatprep.subr.bf16.mxu0 %v1447_v26 }
 0x9b4   :  { %1190 = vmatpush1.bf16.msra.mxu0 %v1463_v30 }
 0x9b5   :  { %1192 = vmatprep.subr.bf16.mxu0 %v1384_v7 }
 0xa7a   :  { %v805_v5 = vpop.f32.mrb[4].mxu0 }
 0xa7b   :  { %v810_v6 = vadd.f32 %v805_v5, %v161_v3  ;;  %v807_v8 = vpop.f32.mrb[5].mxu0 }
 0xa7c   :  { %v811_v10 = vadd.f32 %v807_v8, %v163_v4 }
 0xa7d   :  { %v1071_v11 = vmul.f32 -1.442695, %v810_v6 }
 0xa7e   :  { %v1072_v7 = vmul.f32 -1.442695, %v811_v10 }
 0xa7f   :  { %1301 = vpow2.f32 %v1071_v11 }
 0xa80   :  { %1303 = vtanh.f32 %v811_v10 }
 0xa89   :  { %v1302_v12 = vpop.eup %1301 }
 0xa8a   :  { %v815_v13 = vadd.f32 1.0, %v1302_v12  ;;  %v1304_v15 = vpop.eup %1303 }
 0xa8c   :  { %1305 = vrcp.f32 %v815_v13 }
 0xa8d   :  { %1307 = vpow2.f32 %v1072_v7 }
 0xa96   :  { %v1306_v17 = vpop.eup %1305 }
 0xa97   :  { %v826_v18 = vmul.f32 %v1306_v17, %v1304_v15  ;;  %v1308_v40 = vpop.eup %1307  ;;  %v825_v41 = vmul.f32 %v1306_v17, %v726_v61 }
 0xa98   :  { %v822_v20 = vadd.f32 1.0, %v1308_v40 }
 0xa99   :  { %828 = vrot.lane.b32.xlu0 %v826_v18, %s1338_s3 }
 0xa9a   :  { %1309 = vrcp.f32 %v822_v20 }
 0xaa4   :  { %v1310_v23 = vpop.eup %1309 }
 0xb0b   :  { %v829_v21 = vpop.permute.xlu0 %828 }
 0xb0c   :  { %v831_v22 = vadd.f32 %v829_v21, %v825_v41 }
 0xb0e   :  { %1311 = vtanh.f32 %v831_v22 }
 0xb18   :  { %v1312_v35 = vpop.eup %1311 }
 0xb19   :  { %v833_v24 = vmul.f32 %v1312_v35, %v1310_v23 }
 0xb1b   :  { %839 = vrot.lane.b32.xlu1 %v833_v24, %s1338_s3  ;;  %834 = vst.msk [vmem:[%s1658_s4 + $0x10] sm:$0xff] %vm415_vm2, %v833_v24 }
 0xb8d   :  { %v840_v36 = vpop.permute.xlu1 %839 }
 0xb8e   :  { %1073 = vmatmul.mubr.msk.f32.vlgmr.msra.gmra.mrb[6].mxu0 %vm211_vm1, %v840_v36 }
 0xb8f   :  { %1194 = vmatpush1.bf16.msra.mxu0 %v1390_v9  ;;  %1012 = vmatprep.mubr.f32.mxu0 %v1337_v2  ;;  %v169_v9 = vadd.f32 %v1518_v44, %v1530_v55 }
 0xb90   :  { %1196 = vmatprep.subr.bf16.mxu0 %v1406_v14 }
 0xb93   :  { %1198 = vmatpush1.bf16.msra.mxu0 %v1412_v16 }
 0xb94   :  { %1200 = vmatprep.subr.bf16.mxu0 %v1422_v19 }
 0xb97   :  { %1202 = vmatpush1.bf16.msra.mxu0 %v1444_v25 }
 0xb98   :  { %1204 = vmatprep.subr.bf16.mxu0 %v1447_v26 }
 0xb9b   :  { %1206 = vmatpush1.bf16.msra.mxu0 %v1463_v30 }
 0xc61   :  { %v909_v28 = vpop.f32.mrb[6].mxu0 }
 0xc62   :  { %v914_v2 = vadd.f32 %v909_v28, %v167_v27  ;;  %v911_v29 = vpop.f32.mrb[7].mxu0 }
 0xc63   :  { %v915_v14 = vadd.f32 %v911_v29, %v169_v9 }
 0xc64   :  { %v1074_v31 = vmul.f32 -1.442695, %v914_v2 }
 0xc65   :  { %v1075_v30 = vmul.f32 -1.442695, %v915_v14 }
 0xc66   :  { %1313 = vpow2.f32 %v1074_v31 }
 0xc67   :  { %1315 = vtanh.f32 %v915_v14 }
 0xc70   :  { %v1314_v16 = vpop.eup %1313 }
 0xc71   :  { %v919_v19 = vadd.f32 1.0, %v1314_v16  ;;  %v1316_v25 = vpop.eup %1315 }
 0xc73   :  { %1317 = vrcp.f32 %v919_v19 }
 0xc74   :  { %1319 = vpow2.f32 %v1075_v30 }
 0xc7d   :  { %v1318_v26 = vpop.eup %1317 }
 0xc7e   :  { %v930_v32 = vmul.f32 %v1318_v26, %v1316_v25  ;;  %v1320_v43 = vpop.eup %1319  ;;  %v929_v44 = vmul.f32 %v1318_v26, %v831_v22 }
 0xc7f   :  { %v926_v33 = vadd.f32 1.0, %v1320_v43 }
 0xc80   :  { %932 = vrot.lane.b32.xlu0 %v930_v32, %s1338_s3 }
 0xc81   :  { %1321 = vrcp.f32 %v926_v33 }
 0xc8b   :  { %v1322_v42 = vpop.eup %1321 }
 0xcf2   :  { %v933_v34 = vpop.permute.xlu0 %932 }
 0xcf3   :  { %v935_v39 = vadd.f32 %v933_v34, %v929_v44 }
 0xcf5   :  { %1323 = vtanh.f32 %v935_v39 }
 0xcff   :  { %v1324_v45 = vpop.eup %1323 }
 0xd00   :  { %v937_v46 = vmul.f32 %v1324_v45, %v1322_v42 }
 0xd02   :  { %939 = vrot.lane.b32.xlu1 %v937_v46, %s1338_s3 }
 0xd74   :  { %v940_v50 = vpop.permute.xlu1 %939 }
 0xd75   :  { %942 = vst.msk [vmem:[%s1658_s4 + $0x18] sm:$0xff] %vm211_vm1, %v940_v50  ;;  %1076 = vmatmul.mubr.msk.f32.vlgmr.msra.gmra.mrb[8].mxu0 %vm211_vm1, %v940_v50 }
 0xe48   :  { %v1014_v53 = vpop.f32.mrb[8].mxu0 }
 0xe49   :  { %v1019_v54 = vadd.f32 %v1014_v53, %v173_v51  ;;  %v1016_v56 = vpop.f32.mrb[9].mxu0 }
 0xe4a   :  { %v1020_v57 = vadd.f32 %v1016_v56, %v175_v52 }
 0xe4b   :  { %v1077_v58 = vmul.f32 -1.442695, %v1019_v54 }
 0xe4c   :  { %v1078_v62 = vmul.f32 -1.442695, %v1020_v57 }
 0xe4d   :  { %1325 = vpow2.f32 %v1077_v58 }
 0xe4e   :  { %1327 = vtanh.f32 %v1020_v57 }
 0xe57   :  { %v1326_v37 = vpop.eup %1325 }
 0xe58   :  { %v1024_v59 = vadd.f32 1.0, %v1326_v37  ;;  %v1328_v38 = vpop.eup %1327 }
 0xe5a   :  { %1329 = vrcp.f32 %v1024_v59 }
 0xe5b   :  { %1331 = vpow2.f32 %v1078_v62 }
 0xe64   :  { %v1330_v60 = vpop.eup %1329 }
 0xe65   :  { %v1035_v61 = vmul.f32 %v1330_v60, %v1328_v38  ;;  %v1332_v47 = vpop.eup %1331  ;;  %v1034_v48 = vmul.f32 %v1330_v60, %v935_v39 }
 0xe66   :  { %v1031_v49 = vadd.f32 1.0, %v1332_v47 }
 0xe67   :  { %1037 = vrot.lane.b32.xlu0 %v1035_v61, %s1338_s3 }
 0xe68   :  { %1333 = vrcp.f32 %v1031_v49 }
 0xe72   :  { %v1334_v0 = vpop.eup %1333 }
 0xed9   :  { %v1038_v55 = vpop.permute.xlu0 %1037 }
 0xeda   :  { %v1040_v63 = vadd.f32 %v1038_v55, %v1034_v48 }
 0xedc   :  { %1335 = vtanh.f32 %v1040_v63 }
 0xee6   :  { %v1336_v1 = vpop.eup %1335 }
 0xee7   :  { %v1042_v3 = vmul.f32 %v1336_v1, %v1334_v0 }
 0xee9   :  { %1043 = vst.msk [vmem:[%s1658_s4 + $0x18] sm:$0xff] %vm415_vm2, %v1042_v3 }

</bundles_post_ra>
